<compile_context>
chip_gen: v6e
topology: v6e:2x2x1
jax: 0.10.0
libtpu: 0.0.40
codegen_flags: <defaults>
</compile_context>

<pallas_src>
import jax
import jax.numpy as jnp
from jax.experimental import pallas as pl
from jax.experimental.pallas import tpu as pltpu

K = 3        # conv kernel size
CPAD = 128   # padded per-kh contraction width: Wp*Cin = 102 -> 128 (lane-dense)


def _conv_bias_relu_kernel(x_ref, b_ref, beff_ref, o_ref):
    # x_ref   : (nb, H, K*CPAD)    im2col'd input, kh folded into lanes, zero-padded per kh
    # b_ref   : (K*CPAD, W*Cout)   Toeplitz-expanded conv weights (grid-invariant)
    # beff_ref: (1, W*Cout)        fused bias: b_conv[c] - fc(other)[w] (grid-invariant)
    # o_ref   : (nb, H, W*Cout)    lane-dense output
    nb, h, kd = x_ref.shape
    wc = o_ref.shape[-1]
    lhs = x_ref[...].reshape(nb * h, kd)          # collapse (nb, H) -> MXU rows (free reshape)
    acc = jnp.dot(lhs, b_ref[...], preferred_element_type=jnp.float32)
    o_ref[...] = jnp.maximum(acc + beff_ref[...], 0.0).reshape(nb, h, wc)


def prepare_conv_params(w_conv, b_conv, W):
    """One-time, weight-only preprocessing. Call OUTSIDE the jitted per-call forward."""
    Cout, Cin, Kh, Kw = w_conv.shape
    assert Kh == K and Kw == K
    Wp = W + 2
    WpC = Wp * Cin
    WC = W * Cout

    # Toeplitz expansion: B[kh, p*Cin+ci, w*Cout+c] = w_conv[c, ci, kh, p-w] when 0 <= p-w < K
    w_t = jnp.transpose(w_conv, (2, 3, 1, 0))                                   # (kh, kw, ci, co)
    shift = jnp.arange(K)[:, None, None] + jnp.arange(W)[None, None, :]         # (K, 1, W): kw + w
    ind = (jnp.arange(Wp)[None, :, None] == shift).astype(w_conv.dtype)         # (K, Wp, W)
    B = jnp.einsum('kpw,hkic->hpiwc', ind, w_t).reshape(K, WpC, WC)
    # pad contraction 102 -> 128 per kh and fold kh into one (384, 256) slab -> single GEMM
    B = jnp.pad(B, ((0, 0), (0, CPAD - WpC), (0, 0))).reshape(K * CPAD, WC)

    # conv bias replicated over w: b_rep[w*Cout + c] = b_conv[c]
    b_conv_rep = jnp.tile(b_conv, W)                                            # (WC,)
    return B, b_conv_rep


def model_forward(x_nchw, other, B_slab, b_conv_rep, w_fc, b_fc, *, nb=4):
    """x: (N, Cin, H, W) f32, other: (1, 256) f32 -> relu(conv(x) - fc(other)): (N, Cout, H, W)."""
    N, Cin, H, W = x_nchw.shape
    Dout = w_fc.shape[0]
    # the (N, Cout, H, W) - (1, Dout) broadcast only works when W == Dout
    assert W == Dout, "model is only well-defined when W == Linear out-features"
    WC = B_slab.shape[1]
    Cout = WC // W
    KD = K * CPAD

    # fc hoisted out of the kernel and folded with the conv bias into one lane-dense slab:
    #   out[n, h, w, c] = relu(conv[n, h, w, c] + b_conv[c] - other1[w])
    other1 = other @ w_fc.T + b_fc                                   # (1, W)
    b_eff = (b_conv_rep - jnp.repeat(other1[0], Cout))[None, :]      # (1, W*Cout)

    # layout plumbing: NCHW -> NHWC, spatial pad 1, collapse (w, ci) into lanes,
    # zero-pad lanes 102 -> 128, im2col over kh -> (N, H, 3*128): kernel is one aligned GEMM
    x_nhwc = jnp.transpose(x_nchw, (0, 2, 3, 1))
    xp = jnp.pad(x_nhwc, ((0, 0), (1, 1), (1, 1), (0, 0))).reshape(N, H + 2, (W + 2) * Cin)
    xp = jnp.pad(xp, ((0, 0), (0, 0), (0, CPAD - (W + 2) * Cin)))
    lhs = jnp.concatenate([xp[:, kh:kh + H, :] for kh in range(K)], axis=-1)    # (N, H, KD)

    # block nb images per grid step so M = nb*H fills the MXU; pad batch if needed
    nb = min(nb, N)
    Np = pl.cdiv(N, nb) * nb
    if Np != N:
        lhs = jnp.pad(lhs, ((0, Np - N), (0, 0), (0, 0)))

    out = pl.pallas_call(
        _conv_bias_relu_kernel,
        out_shape=jax.ShapeDtypeStruct((Np, H, WC), jnp.float32),
        grid=(Np // nb,),
        in_specs=[
            pl.BlockSpec((nb, H, KD), lambda n: (n, 0, 0)),
            pl.BlockSpec((KD, WC), lambda n: (0, 0)),      # grid-invariant: DMA'd once
            pl.BlockSpec((1, WC), lambda n: (0, 0)),       # grid-invariant: DMA'd once
        ],
        out_specs=pl.BlockSpec((nb, H, WC), lambda n: (n, 0, 0)),
        compiler_params=pltpu.CompilerParams(dimension_semantics=("parallel",)),
    )(lhs, B_slab, b_eff)

    # lane-dense (Np, H, W*Cout) -> NCHW (keep the transpose in the wrapper: in-kernel NCHW
    # output would shrink the store lane width to 32 and force masked stores)
    return jnp.transpose(out[:N].reshape(N, H, W, Cout), (0, 3, 1, 2))


if __name__ == "__main__":
    key = jax.random.PRNGKey(0)
    k1, k2, k3, k4, k5, k6 = jax.random.split(key, 6)

    # W == fc out-features (32); batch 8 exercises nb=4 blocking (grid of 2 "parallel" steps)
    N, Cin, Cout, H, W = 8, 3, 8, 32, 32
    Din, Dout = 256, 32

    x = jax.random.normal(k1, (N, Cin, H, W), jnp.float32)
    other = jax.random.normal(k2, (1, Din), jnp.float32)
    # deterministic synthetic parameters (shapes match nn.Conv2d(3,8,3) / nn.Linear(256,32))
    w_conv = jax.random.normal(k3, (Cout, Cin, K, K), jnp.float32) * 0.1
    b_conv = jax.random.normal(k4, (Cout,), jnp.float32) * 0.1
    w_fc = jax.random.normal(k5, (Dout, Din), jnp.float32) * 0.05
    b_fc = jax.random.normal(k6, (Dout,), jnp.float32) * 0.05

    # weight-only preprocessing done ONCE, outside the per-call (jitted) path
    B_slab, b_conv_rep = jax.block_until_ready(prepare_conv_params(w_conv, b_conv, W))

    fwd = jax.jit(model_forward)
    out = jax.block_until_ready(fwd(x, other, B_slab, b_conv_rep, w_fc, b_fc))

    # pure-JAX reference for correctness
    v1 = jax.lax.conv_general_dilated(
        x, w_conv, window_strides=(1, 1), padding=((1, 1), (1, 1)),
        dimension_numbers=("NCHW", "OIHW", "NCHW"),
        precision=jax.lax.Precision.HIGHEST) + b_conv.reshape(1, Cout, 1, 1)
    other1_ref = other @ w_fc.T + b_fc
    ref = jnp.maximum(v1 - other1_ref, 0.0)

    assert out.shape == ref.shape == (N, Cout, H, W)
    err = float(jnp.max(jnp.abs(out - ref)))
    assert jnp.allclose(out, ref, atol=2e-3, rtol=2e-3), err
    print("KERNEL_OK")
</pallas_src>

<mosaic_0001>
module attributes {stable_mosaic.version = 11 : i64} {
  func.func @_conv_bias_relu_kernel(%arg0: i32, %arg1: memref<4x32x384xf32, #tpu.memory_space<vmem>>, %arg2: memref<384x256xf32, #tpu.memory_space<vmem>>, %arg3: memref<1x256xf32, #tpu.memory_space<vmem>>, %arg4: memref<4x32x256xf32, #tpu.memory_space<vmem>>) attributes {dimension_semantics = [#tpu.dimension_semantics<parallel>], iteration_bounds = array<i64: 2>, scalar_prefetch = 0 : i64, scratch_operands = 0 : i64, tpu.core_type = #tpu.core_type<tc>, window_params = [{transform_indices = @transform_0, window_bounds = array<i64: 4, 32, 384>}, {pipeline_mode = #tpu.pipeline_mode<synchronous>, transform_indices = @transform_1, window_bounds = array<i64: 384, 256>}, {pipeline_mode = #tpu.pipeline_mode<synchronous>, transform_indices = @transform_2, window_bounds = array<i64: 1, 256>}, {transform_indices = @transform_3, window_bounds = array<i64: 4, 32, 256>}]} {
    %c0 = arith.constant 0 : index
    %c0_0 = arith.constant 0 : index
    %c0_1 = arith.constant 0 : index
    %0 = vector.load %arg1[%c0, %c0_0, %c0_1] : memref<4x32x384xf32, #tpu.memory_space<vmem>>, vector<4x32x384xf32>
    %1 = vector.shape_cast %0 : vector<4x32x384xf32> to vector<128x384xf32>
    %c0_2 = arith.constant 0 : index
    %c0_3 = arith.constant 0 : index
    %2 = vector.load %arg2[%c0_2, %c0_3] : memref<384x256xf32, #tpu.memory_space<vmem>>, vector<384x256xf32>
    %cst = arith.constant dense<0.000000e+00> : vector<128x256xf32>
    %3 = tpu.matmul %1, %2, %cst {dimension_numbers = #tpu.dot_dimension_numbers<[1], [0], [0], [1], [0, 0, 1, 1], [], []>} : vector<128x384xf32>, vector<384x256xf32>, vector<128x256xf32> -> vector<128x256xf32>
    %c0_4 = arith.constant 0 : index
    %c0_5 = arith.constant 0 : index
    %4 = vector.load %arg3[%c0_4, %c0_5] : memref<1x256xf32, #tpu.memory_space<vmem>>, vector<1x256xf32>
    %5 = vector.broadcast %4 : vector<1x256xf32> to vector<128x256xf32>
    %6 = arith.addf %3, %5 : vector<128x256xf32>
    %cst_6 = arith.constant 0.000000e+00 : f32
    %7 = vector.broadcast %cst_6 : f32 to vector<128x256xf32>
    %8 = arith.maximumf %6, %7 : vector<128x256xf32>
    %9 = vector.shape_cast %8 : vector<128x256xf32> to vector<4x32x256xf32>
    %c0_7 = arith.constant 0 : index
    %c0_8 = arith.constant 0 : index
    %c0_9 = arith.constant 0 : index
    %10 = vector.load %arg4[%c0_7, %c0_8, %c0_9] : memref<4x32x256xf32, #tpu.memory_space<vmem>>, vector<4x32x256xf32>
    tpu.vector_store %arg4[%c0_7, %c0_8, %c0_9], %9 {strides = array<i32>} : memref<4x32x256xf32, #tpu.memory_space<vmem>>, vector<4x32x256xf32>,
    return
  }
  func.func @transform_0(%arg0: i32) -> (i32, i32, i32) {
    %c0_i32 = arith.constant 0 : i32
    %c0_i32_0 = arith.constant 0 : i32
    %c0_i32_1 = arith.constant 0 : i32
    return %arg0, %c0_i32, %c0_i32_0 : i32, i32, i32
  }
  func.func @transform_1(%arg0: i32) -> (i32, i32) {
    %c0_i32 = arith.constant 0 : i32
    %c0_i32_0 = arith.constant 0 : i32
    %c0_i32_1 = arith.constant 0 : i32
    return %c0_i32, %c0_i32_0 : i32, i32
  }
  func.func @transform_2(%arg0: i32) -> (i32, i32) {
    %c0_i32 = arith.constant 0 : i32
    %c0_i32_0 = arith.constant 0 : i32
    %c0_i32_1 = arith.constant 0 : i32
    return %c0_i32, %c0_i32_0 : i32, i32
  }
  func.func @transform_3(%arg0: i32) -> (i32, i32, i32) {
    %c0_i32 = arith.constant 0 : i32
    %c0_i32_0 = arith.constant 0 : i32
    %c0_i32_1 = arith.constant 0 : i32
    return %arg0, %c0_i32, %c0_i32_0 : i32, i32, i32
  }
}

</mosaic_0001>

<bundles_post_ra>
// kernel: sub.1
= control target key start
LH: loop header
LB: loop body
LE: loop exit
PB: predicated region body
PF: predicated region fallthrough
CT: control target
= control target key end

     0   :  { %s34_s0 = inlined_call_operand.vmem [shape: f32[256], index: 0, kind: input, shape index: {}]   ;;  %s35_s1 = inlined_call_operand.vmem [shape: f32[256], index: 1, kind: input, shape index: {}]   ;;  %s36_s2 = inlined_call_operand.vmem [shape: f32[256], index: 2, kind: output, shape index: {}]  }
   0x1   :  { %v3_v0 = vld [vmem:[%s34_s0] sm:$0x3] }
   0x2   :  { %v4_v1 = vld [vmem:[%s35_s1] sm:$0x3] }
   0x3   :  { %v7_v2 = vsub.f32 %v3_v0, %v4_v1 }
   0x5   :  { %9 = vst [vmem:[%s36_s2] sm:$0x3] %v7_v2 }

// kernel: model_forward.1
= control target key start
LH: loop header
LB: loop body
LE: loop exit
PB: predicated region body
PF: predicated region fallthrough
CT: control target
= control target key end

     0   :  { %s831_s12 = smov 0   ;;  %s1320_s0 = inlined_call_operand.vmem [shape: f32[8,32,384], index: 0, kind: input, shape index: {}]   ;;  %s1321_s1 = inlined_call_operand.vmem [shape: f32[384,256], index: 1, kind: input, shape index: {}]   ;;  %s1322_s2 = inlined_call_operand.vmem [shape: f32[1,256], index: 2, kind: input, shape index: {}]   ;;  %s1323_s3 = inlined_call_operand.vmem [shape: f32[8,32,256], index: 3, kind: output, shape index: {}]  }
   0x1 LB: > { %s779_s13 = sadd.s32 4294967295, %s808_s12   ;;  %p783_p0 = scmp.ge.s32.totalorder %s808_s12, 1  ;;  %s808_s12 = sphi %s831_s12, %s13_s12  }
   0x2   : > { %p139_p1 = scmp.lt.s32.totalorder %s808_s12, 3 }
   0x4   : > { %p140_p2 = pnand %p783_p0, %p139_p1 }
   0x5   : > { %s959_s17 = sshll.u32 (!%p140_p2), %s779_s13, 2 }
   0x6   : > { %143 = sbr.rel (%p140_p2) target bundleno = 338 (0x152), region = 32  ;;  %p166_p3 = scmp.lt.s32.totalorder (!%p140_p2), %s959_s17, 7 }
   0xb   : > { %v258_v0 = vld [vmem:[%s1321_s1 + $0xf8] sm:$0xff]  ;;  %v257_v1 = vld [vmem:[%s1321_s1 + $0xf0] sm:$0xff]  ;;  %v256_v2 = vld [vmem:[%s1321_s1 + $0xe8] sm:$0xff]  ;;  %v810_v4 = vmov 0.0   ;;  %s1325_s17 = smov (!%p166_p3, %s959_s17), 7 }
   0xc   : > { %335 = vmatprep.subr.mxu0 %v258_v0  ;;  %v255_v3 = vld [vmem:[%s1321_s1 + $0xe0] sm:$0xff]  ;;  %560 = vmatprep.mubr.f32.mxu1 %v810_v4  ;;  %v254_v5 = vld [vmem:[%s1321_s1 + $0xd8] sm:$0xff]  ;;  %v253_v6 = vld [vmem:[%s1321_s1 + $0xd0] sm:$0xff]  ;;  %s792_s9 = smul.u32 96, %s1325_s17 }
   0xd   : > { %336 = vmatpush1.msra.mxu0 %v257_v1  ;;  %v252_v7 = vld [vmem:[%s1321_s1 + $0xc8] sm:$0xff]  ;;  %v251_v8 = vld [vmem:[%s1321_s1 + $0xc0] sm:$0xff]  ;;  %v250_v9 = vld [vmem:[%s1321_s1 + $0xb8] sm:$0xff] }
   0xe   : > { %337 = vmatprep.subr.mxu0 %v256_v2  ;;  %v249_v10 = vld [vmem:[%s1321_s1 + $0xb0] sm:$0xff]  ;;  %v248_v11 = vld [vmem:[%s1321_s1 + $0xa8] sm:$0xff]  ;;  %v247_v12 = vld [vmem:[%s1321_s1 + $0xa0] sm:$0xff]  ;;  %s1061_s30 = scalar_lea.vmem %s1320_s0, %s792_s9 }
   0xf   : > { %338 = vmatpush1.msra.mxu0 %v255_v3  ;;  %v246_v13 = vld [vmem:[%s1321_s1 + $0x98] sm:$0xff]  ;;  %v245_v14 = vld [vmem:[%s1321_s1 + $0x90] sm:$0xff]  ;;  %v244_v17 = vld [vmem:[%s1321_s1 + $0x88] sm:$0xff] }
  0x10   : > { %339 = vmatprep.subr.mxu0 %v254_v5  ;;  %v322_v15 = vld [vmem:[%s1321_s1 + $0x2f8] sm:$0xff]  ;;  %v321_v16 = vld [vmem:[%s1321_s1 + $0x2f0] sm:$0xff]  ;;  %v320_v18 = vld [vmem:[%s1321_s1 + $0x2e8] sm:$0xff] }
  0x11   : > { %340 = vmatpush1.msra.mxu0 %v253_v6  ;;  %496 = vmatprep.subr.mxu1 %v322_v15  ;;  %v243_v19 = vld [vmem:[%s1321_s1 + $0x80] sm:$0xff]  ;;  %v318_v21 = vld [vmem:[%s1321_s1 + $0x2d8] sm:$0xff]  ;;  %v317_v23 = vld [vmem:[%s1321_s1 + $0x2d0] sm:$0xff] }
  0x12   : > { %341 = vmatprep.subr.mxu0 %v252_v7  ;;  %497 = vmatpush1.msra.mxu1 %v321_v16  ;;  %v319_v20 = vld [vmem:[%s1321_s1 + $0x2e0] sm:$0xff]  ;;  %v242_v22 = vld [vmem:[%s1321_s1 + $0x78] sm:$0xff]  ;;  %v241_v24 = vld [vmem:[%s1321_s1 + $0x70] sm:$0xff] }
  0x13   : > { %342 = vmatpush1.msra.mxu0 %v251_v8  ;;  %498 = vmatprep.subr.mxu1 %v320_v18  ;;  %v316_v25 = vld [vmem:[%s1321_s1 + $0x2c8] sm:$0xff]  ;;  %v315_v27 = vld [vmem:[%s1321_s1 + $0x2c0] sm:$0xff]  ;;  %v314_v29 = vld [vmem:[%s1321_s1 + $0x2b8] sm:$0xff] }
  0x14   : > { %343 = vmatprep.subr.mxu0 %v250_v9  ;;  %499 = vmatpush1.msra.mxu1 %v319_v20  ;;  %v240_v26 = vld [vmem:[%s1321_s1 + $0x68] sm:$0xff]  ;;  %v239_v28 = vld [vmem:[%s1321_s1 + $0x60] sm:$0xff]  ;;  %v238_v30 = vld [vmem:[%s1321_s1 + $0x58] sm:$0xff] }
  0x15   : > { %344 = vmatpush1.msra.mxu0 %v249_v10  ;;  %500 = vmatprep.subr.mxu1 %v318_v21  ;;  %v313_v31 = vld [vmem:[%s1321_s1 + $0x2b0] sm:$0xff]  ;;  %v312_v33 = vld [vmem:[%s1321_s1 + $0x2a8] sm:$0xff]  ;;  %v311_v35 = vld [vmem:[%s1321_s1 + $0x2a0] sm:$0xff] }
  0x16   : > { %345 = vmatprep.subr.mxu0 %v248_v11  ;;  %501 = vmatpush1.msra.mxu1 %v317_v23  ;;  %v237_v32 = vld [vmem:[%s1321_s1 + $0x50] sm:$0xff]  ;;  %v236_v34 = vld [vmem:[%s1321_s1 + $0x48] sm:$0xff]  ;;  %v235_v36 = vld [vmem:[%s1321_s1 + $0x40] sm:$0xff] }
  0x17   : > { %346 = vmatpush1.msra.mxu0 %v247_v12  ;;  %502 = vmatprep.subr.mxu1 %v316_v25  ;;  %v310_v37 = vld [vmem:[%s1321_s1 + $0x298] sm:$0xff]  ;;  %v309_v39 = vld [vmem:[%s1321_s1 + $0x290] sm:$0xff]  ;;  %v308_v41 = vld [vmem:[%s1321_s1 + $0x288] sm:$0xff] }
  0x18   : > { %347 = vmatprep.subr.mxu0 %v246_v13  ;;  %503 = vmatpush1.msra.mxu1 %v315_v27  ;;  %v234_v38 = vld [vmem:[%s1321_s1 + $0x38] sm:$0xff]  ;;  %v233_v40 = vld [vmem:[%s1321_s1 + $0x30] sm:$0xff]  ;;  %v232_v42 = vld [vmem:[%s1321_s1 + $0x28] sm:$0xff] }
  0x19   : > { %348 = vmatpush1.msra.mxu0 %v245_v14  ;;  %504 = vmatprep.subr.mxu1 %v314_v29  ;;  %v307_v43 = vld [vmem:[%s1321_s1 + $0x280] sm:$0xff]  ;;  %v306_v45 = vld [vmem:[%s1321_s1 + $0x278] sm:$0xff]  ;;  %v305_v47 = vld [vmem:[%s1321_s1 + $0x270] sm:$0xff] }
  0x1a   : > { %349 = vmatprep.subr.mxu0 %v244_v17  ;;  %505 = vmatpush1.msra.mxu1 %v313_v31  ;;  %v231_v44 = vld [vmem:[%s1321_s1 + $0x20] sm:$0xff]  ;;  %v230_v46 = vld [vmem:[%s1321_s1 + $0x18] sm:$0xff]  ;;  %v229_v48 = vld [vmem:[%s1321_s1 + $0x10] sm:$0xff] }
  0x1b   : > { %350 = vmatpush1.msra.mxu0 %v243_v19  ;;  %506 = vmatprep.subr.mxu1 %v312_v33  ;;  %v304_v49 = vld [vmem:[%s1321_s1 + $0x268] sm:$0xff]  ;;  %v303_v51 = vld [vmem:[%s1321_s1 + $0x260] sm:$0xff]  ;;  %v302_v53 = vld [vmem:[%s1321_s1 + $0x258] sm:$0xff] }
  0x1c   : > { %351 = vmatprep.subr.mxu0 %v242_v22  ;;  %507 = vmatpush1.msra.mxu1 %v311_v35  ;;  %v228_v50 = vld [vmem:[%s1321_s1 + $0x8] sm:$0xff]  ;;  %v227_v52 = vld [vmem:[%s1321_s1] sm:$0xff]  ;;  %v290_v54 = vld [vmem:[%s1321_s1 + $0x1f8] sm:$0xff] }
  0x1d   : > { %352 = vmatpush1.msra.mxu0 %v241_v24  ;;  %508 = vmatprep.subr.mxu1 %v310_v37  ;;  %v301_v55 = vld [vmem:[%s1321_s1 + $0x250] sm:$0xff]  ;;  %v300_v57 = vld [vmem:[%s1321_s1 + $0x248] sm:$0xff]  ;;  %v299_v59 = vld [vmem:[%s1321_s1 + $0x240] sm:$0xff] }
  0x1e   : > { %353 = vmatprep.subr.mxu0 %v240_v26  ;;  %509 = vmatpush1.msra.mxu1 %v309_v39  ;;  %v289_v56 = vld [vmem:[%s1321_s1 + $0x1f0] sm:$0xff]  ;;  %v288_v58 = vld [vmem:[%s1321_s1 + $0x1e8] sm:$0xff]  ;;  %v287_v60 = vld [vmem:[%s1321_s1 + $0x1e0] sm:$0xff] }
  0x1f   : > { %354 = vmatpush1.msra.mxu0 %v239_v28  ;;  %510 = vmatprep.subr.mxu1 %v308_v41  ;;  %v298_v61 = vld [vmem:[%s1321_s1 + $0x238] sm:$0xff]  ;;  %v297_v63 = vld [vmem:[%s1321_s1 + $0x230] sm:$0xff]  ;;  %v296_v1 = vld [vmem:[%s1321_s1 + $0x228] sm:$0xff] }
  0x20   : > { %355 = vmatprep.subr.mxu0 %v238_v30  ;;  %511 = vmatpush1.msra.mxu1 %v307_v43  ;;  %v286_v62 = vld [vmem:[%s1321_s1 + $0x1d8] sm:$0xff]  ;;  %v285_v0 = vld [vmem:[%s1321_s1 + $0x1d0] sm:$0xff]  ;;  %v284_v2 = vld [vmem:[%s1321_s1 + $0x1c8] sm:$0xff] }
  0x21   : > { %356 = vmatpush1.msra.mxu0 %v237_v32  ;;  %512 = vmatprep.subr.mxu1 %v306_v45  ;;  %v295_v3 = vld [vmem:[%s1321_s1 + $0x220] sm:$0xff]  ;;  %v294_v6 = vld [vmem:[%s1321_s1 + $0x218] sm:$0xff]  ;;  %v293_v8 = vld [vmem:[%s1321_s1 + $0x210] sm:$0xff] }
  0x22   : > { %357 = vmatprep.subr.mxu0 %v236_v34  ;;  %513 = vmatpush1.msra.mxu1 %v305_v47  ;;  %v283_v5 = vld [vmem:[%s1321_s1 + $0x1c0] sm:$0xff]  ;;  %v282_v7 = vld [vmem:[%s1321_s1 + $0x1b8] sm:$0xff]  ;;  %v281_v9 = vld [vmem:[%s1321_s1 + $0x1b0] sm:$0xff] }
  0x23   : > { %358 = vmatpush1.msra.mxu0 %v235_v36  ;;  %514 = vmatprep.subr.mxu1 %v304_v49  ;;  %v292_v10 = vld [vmem:[%s1321_s1 + $0x208] sm:$0xff]  ;;  %v279_v13 = vld [vmem:[%s1321_s1 + $0x1a0] sm:$0xff]  ;;  %v278_v15 = vld [vmem:[%s1321_s1 + $0x198] sm:$0xff] }
  0x24   : > { %359 = vmatprep.subr.mxu0 %v234_v38  ;;  %515 = vmatpush1.msra.mxu1 %v303_v51  ;;  %v280_v11 = vld [vmem:[%s1321_s1 + $0x1a8] sm:$0xff]  ;;  %v291_v14 = vld [vmem:[%s1321_s1 + $0x200] sm:$0xff]  ;;  %v181_v16 = vld [vmem:[%s1061_s30 + $0x10] sm:$0xff] }
  0x25   : > { %360 = vmatpush1.msra.mxu0 %v233_v40  ;;  %516 = vmatprep.subr.mxu1 %v302_v53  ;;  %v180_v12 = vld [vmem:[%s1061_s30 + $0x8] sm:$0xff]  ;;  %v277_v17 = vld [vmem:[%s1321_s1 + $0x190] sm:$0xff]  ;;  %v275_v19 = vld [vmem:[%s1321_s1 + $0x180] sm:$0xff] }
  0x26   : > { %361 = vmatprep.subr.mxu0 %v232_v42  ;;  %517 = vmatpush1.msra.mxu1 %v301_v55  ;;  %v276_v18 = vld [vmem:[%s1321_s1 + $0x188] sm:$0xff]  ;;  %v274_v20 = vld [vmem:[%s1321_s1 + $0x178] sm:$0xff]  ;;  %v273_v22 = vld [vmem:[%s1321_s1 + $0x170] sm:$0xff] }
  0x27   : > { %362 = vmatpush1.msra.mxu0 %v231_v44  ;;  %518 = vmatprep.subr.mxu1 %v300_v57  ;;  %v184_v21 = vld [vmem:[%s1061_s30 + $0x28] sm:$0xff]  ;;  %v271_v24 = vld [vmem:[%s1321_s1 + $0x160] sm:$0xff]  ;;  %v270_v25 = vld [vmem:[%s1321_s1 + $0x158] sm:$0xff] }
  0x28   : > { %363 = vmatprep.subr.mxu0 %v230_v46  ;;  %519 = vmatpush1.msra.mxu1 %v299_v59  ;;  %v272_v23 = vld [vmem:[%s1321_s1 + $0x168] sm:$0xff]  ;;  %v187_v26 = vld [vmem:[%s1061_s30 + $0x40] sm:$0xff]  ;;  %v269_v27 = vld [vmem:[%s1321_s1 + $0x150] sm:$0xff] }
  0x29   : > { %364 = vmatpush1.msra.mxu0 %v229_v48  ;;  %520 = vmatprep.subr.mxu1 %v298_v61  ;;  %v268_v28 = vld [vmem:[%s1321_s1 + $0x148] sm:$0xff]  ;;  %v267_v29 = vld [vmem:[%s1321_s1 + $0x140] sm:$0xff]  ;;  %v266_v30 = vld [vmem:[%s1321_s1 + $0x138] sm:$0xff] }
  0x2a   : > { %365 = vmatprep.subr.mxu0 %v228_v50  ;;  %521 = vmatpush1.msra.mxu1 %v297_v63  ;;  %v190_v31 = vld [vmem:[%s1061_s30 + $0x58] sm:$0xff]  ;;  %v265_v32 = vld [vmem:[%s1321_s1 + $0x130] sm:$0xff]  ;;  %v264_v33 = vld [vmem:[%s1321_s1 + $0x128] sm:$0xff] }
  0x2b   : > { %366 = vmatpush1.msra.mxu0 %v227_v52  ;;  %522 = vmatprep.subr.mxu1 %v296_v1  ;;  %v263_v34 = vld [vmem:[%s1321_s1 + $0x120] sm:$0xff]  ;;  %v262_v35 = vld [vmem:[%s1321_s1 + $0x118] sm:$0xff]  ;;  %v193_v36 = vld [vmem:[%s1061_s30 + $0x70] sm:$0xff] }
  0x2c   : > { %367 = vmatprep.subr.mxu0 %v290_v54  ;;  %523 = vmatpush1.msra.mxu1 %v295_v3  ;;  %v261_v37 = vld [vmem:[%s1321_s1 + $0x110] sm:$0xff]  ;;  %v260_v38 = vld [vmem:[%s1321_s1 + $0x108] sm:$0xff]  ;;  %v259_v39 = vld [vmem:[%s1321_s1 + $0x100] sm:$0xff] }
  0x2d   : > { %368 = vmatpush2.msra.mxu0 %v289_v56  ;;  %524 = vmatprep.subr.mxu1 %v294_v6  ;;  %v179_v40 = vld [vmem:[%s1061_s30] sm:$0xff]  ;;  %v196_v41 = vld [vmem:[%s1061_s30 + $0x88] sm:$0xff]  ;;  %v182_v43 = vld [vmem:[%s1061_s30 + $0x18] sm:$0xff] }
  0x2e   : > { %369 = vmatprep.subr.mxu0 %v288_v58  ;;  %525 = vmatpush1.msra.mxu1 %v293_v8  ;;  %v183_v42 = vld [vmem:[%s1061_s30 + $0x20] sm:$0xff]  ;;  %v186_v45 = vld [vmem:[%s1061_s30 + $0x38] sm:$0xff]  ;;  %v185_v46 = vld [vmem:[%s1061_s30 + $0x30] sm:$0xff] }
  0x2f   : > { %370 = vmatpush2.msra.mxu0 %v287_v60  ;;  %526 = vmatprep.subr.mxu1 %v292_v10  ;;  %v199_v44 = vld [vmem:[%s1061_s30 + $0xa0] sm:$0xff]  ;;  %v202_v47 = vld [vmem:[%s1061_s30 + $0xb8] sm:$0xff]  ;;  %v189_v48 = vld [vmem:[%s1061_s30 + $0x50] sm:$0xff] }
  0x30   : > { %371 = vmatprep.subr.mxu0 %v286_v62  ;;  %399 = vmatprep.mubr.f32.mxu0 %v180_v12  ;;  %v188_v49 = vld [vmem:[%s1061_s30 + $0x48] sm:$0xff]  ;;  %v205_v50 = vld [vmem:[%s1061_s30 + $0xd0] sm:$0xff]  ;;  %v191_v52 = vld [vmem:[%s1061_s30 + $0x60] sm:$0xff] }
  0x31   : > { %372 = vmatpush2.msra.mxu0 %v285_v0  ;;  %527 = vmatpush1.msra.mxu1 %v291_v14  ;;  %v192_v51 = vld [vmem:[%s1061_s30 + $0x68] sm:$0xff]  ;;  %v195_v54 = vld [vmem:[%s1061_s30 + $0x80] sm:$0xff]  ;;  %v194_v55 = vld [vmem:[%s1061_s30 + $0x78] sm:$0xff] }
  0x32   : > { %373 = vmatprep.subr.mxu0 %v284_v2  ;;  %561 = vmatmul.mubr.f32.vlgmr.msra.gmra.mxu1 %v181_v16  ;;  %v208_v53 = vld [vmem:[%s1061_s30 + $0xe8] sm:$0xff]  ;;  %v211_v56 = vld [vmem:[%s1061_s30 + $0x100] sm:$0xff]  ;;  %v198_v57 = vld [vmem:[%s1061_s30 + $0x98] sm:$0xff] }
  0x33   : > { %374 = vmatpush2.msra.mxu0 %v283_v5  ;;  %566 = vmatprep.mubr.f32.mxu1 %v810_v4  ;;  %v197_v58 = vld [vmem:[%s1061_s30 + $0x90] sm:$0xff]  ;;  %v214_v59 = vld [vmem:[%s1061_s30 + $0x118] sm:$0xff]  ;;  %v200_v61 = vld [vmem:[%s1061_s30 + $0xa8] sm:$0xff] }
  0x34   : > { %375 = vmatprep.subr.mxu0 %v282_v7  ;;  %v201_v60 = vld [vmem:[%s1061_s30 + $0xb0] sm:$0xff]  ;;  %v204_v63 = vld [vmem:[%s1061_s30 + $0xc8] sm:$0xff]  ;;  %v203_v0 = vld [vmem:[%s1061_s30 + $0xc0] sm:$0xff] }
  0x35   : > { %376 = vmatpush2.msra.mxu0 %v281_v9  ;;  %v217_v62 = vld [vmem:[%s1061_s30 + $0x130] sm:$0xff]  ;;  %v220_v1 = vld [vmem:[%s1061_s30 + $0x148] sm:$0xff]  ;;  %v207_v2 = vld [vmem:[%s1061_s30 + $0xe0] sm:$0xff] }
  0x36   : > { %377 = vmatprep.subr.mxu0 %v280_v11  ;;  %567 = vmatmul.mubr.f32.gmra.mxu1 %v184_v21  ;;  %v206_v3 = vld [vmem:[%s1061_s30 + $0xd8] sm:$0xff]  ;;  %v223_v5 = vld [vmem:[%s1061_s30 + $0x160] sm:$0xff]  ;;  %v209_v7 = vld [vmem:[%s1061_s30 + $0xf0] sm:$0xff]  ;;  %v325_v21 = vlaneseq }
  0x37   : > { %378 = vmatpush2.msra.mxu0 %v279_v13  ;;  %572 = vmatprep.mubr.f32.mxu1 %v810_v4  ;;  %v210_v6 = vld [vmem:[%s1061_s30 + $0xf8] sm:$0xff]  ;;  %v213_v9 = vld [vmem:[%s1061_s30 + $0x110] sm:$0xff]  ;;  %v212_v10 = vld [vmem:[%s1061_s30 + $0x108] sm:$0xff] }
  0x38   : > { %379 = vmatprep.subr.mxu0 %v278_v15  ;;  %v226_v8 = vld [vmem:[%s1061_s30 + $0x178] sm:$0xff]  ;;  %v216_v11 = vld [vmem:[%s1061_s30 + $0x128] sm:$0xff]  ;;  %v215_v12 = vld [vmem:[%s1061_s30 + $0x120] sm:$0xff] }
  0x39   : > { %380 = vmatpush2.msra.mxu0 %v277_v17  ;;  %v219_v13 = vld [vmem:[%s1061_s30 + $0x140] sm:$0xff]  ;;  %v218_v14 = vld [vmem:[%s1061_s30 + $0x138] sm:$0xff]  ;;  %v225_v16 = vld [vmem:[%s1061_s30 + $0x170] sm:$0xff] }
  0x3a   : > { %381 = vmatprep.subr.mxu0 %v276_v18  ;;  %573 = vmatmul.mubr.f32.gmra.mxu1 %v187_v26  ;;  %v222_v15 = vld [vmem:[%s1061_s30 + $0x158] sm:$0xff]  ;;  %v224_v17 = vld [vmem:[%s1061_s30 + $0x168] sm:$0xff] }
  0x3b   : > { %382 = vmatpush2.msra.mxu0 %v275_v19  ;;  %578 = vmatprep.mubr.f32.mxu1 %v810_v4 }
  0x3c   : > { %383 = vmatprep.subr.mxu0 %v274_v20 }
  0x3d   : > { %384 = vmatpush2.msra.mxu0 %v273_v22 }
  0x3e   : > { %385 = vmatprep.subr.mxu0 %v272_v23  ;;  %579 = vmatmul.mubr.f32.gmra.mxu1 %v190_v31 }
  0x3f   : > { %386 = vmatpush2.msra.mxu0 %v271_v24  ;;  %584 = vmatprep.mubr.f32.mxu1 %v810_v4  ;;  %v326_v24 = vshrl.u32 %v325_v21, 7 }
  0x40   : > { %387 = vmatprep.subr.mxu0 %v270_v25 }
  0x41   : > { %388 = vmatpush2.msra.mxu0 %v269_v27  ;;  %v327_v27 = vsub.s32 0, %v326_v24 }
  0x42   : > { %389 = vmatprep.subr.mxu0 %v268_v28  ;;  %585 = vmatmul.mubr.f32.gmra.mxu1 %v193_v36  ;;  %v323_v28 = vld [vmem:[%s1322_s2] sm:$0x3] }
  0x43   : > { %390 = vmatpush2.msra.mxu0 %v267_v29  ;;  %590 = vmatprep.mubr.f32.mxu1 %v810_v4 }
  0x44   : > { %391 = vmatprep.subr.mxu0 %v266_v30  ;;  %v331_v30 = vsub.s32 1, %v326_v24 }
  0x45   : > { %392 = vmatpush2.msra.mxu0 %v265_v32  ;;  %v1210_v32 = vrot.slane %v323_v28, %v327_v27 }
  0x46   : > { %393 = vmatprep.subr.mxu0 %v264_v33  ;;  %591 = vmatmul.mubr.f32.gmra.mxu1 %v196_v41 }
  0x47   : > { %394 = vmatpush2.msra.mxu0 %v263_v34  ;;  %596 = vmatprep.mubr.f32.mxu1 %v810_v4  ;;  %v1212_v34 = vrot.slane %v323_v28, %v331_v30 }
  0x48   : > { %395 = vmatprep.subr.mxu0 %v262_v35 }
  0x49   : > { %396 = vmatpush2.msra.mxu0 %v261_v37 }
  0x4a   : > { %397 = vmatprep.subr.mxu0 %v260_v38  ;;  %597 = vmatmul.mubr.f32.gmra.mxu1 %v199_v44 }
  0x4b   : > { %398 = vmatpush2.msra.mxu0 %v259_v39  ;;  %602 = vmatprep.mubr.f32.mxu1 %v810_v4 }
  0x4c   : > { %400 = vmatmul.mubr.f32.vlgmr.msra.gmra.mxu0 %v179_v40 }
  0x4d   : > { %405 = vmatprep.mubr.f32.mxu0 %v183_v42 }
  0x4e   : > { %603 = vmatmul.mubr.f32.gmra.mxu1 %v202_v47 }
  0x4f   : > { %608 = vmatprep.mubr.f32.mxu1 %v810_v4 }
  0x50   : > { %406 = vmatmul.mubr.f32.gmra.mxu0 %v182_v43 }
  0x51   : > { %411 = vmatprep.mubr.f32.mxu0 %v186_v45 }
  0x52   : > { %609 = vmatmul.mubr.f32.gmra.mxu1 %v205_v50 }
  0x53   : > { %614 = vmatprep.mubr.f32.mxu1 %v810_v4 }
  0x54   : > { %412 = vmatmul.mubr.f32.gmra.mxu0 %v185_v46 }
  0x55   : > { %417 = vmatprep.mubr.f32.mxu0 %v189_v48 }
  0x56   : > { %615 = vmatmul.mubr.f32.gmra.mxu1 %v208_v53 }
  0x57   : > { %620 = vmatprep.mubr.f32.mxu1 %v810_v4 }
  0x58   : > { %418 = vmatmul.mubr.f32.gmra.mxu0 %v188_v49 }
  0x59   : > { %423 = vmatprep.mubr.f32.mxu0 %v192_v51 }
  0x5a   : > { %621 = vmatmul.mubr.f32.gmra.mxu1 %v211_v56 }
  0x5b   : > { %626 = vmatprep.mubr.f32.mxu1 %v810_v4 }
  0x5c   : > { %424 = vmatmul.mubr.f32.gmra.mxu0 %v191_v52 }
  0x5d   : > { %429 = vmatprep.mubr.f32.mxu0 %v195_v54 }
  0x5e   : > { %627 = vmatmul.mubr.f32.gmra.mxu1 %v214_v59 }
  0x5f   : > { %632 = vmatprep.mubr.f32.mxu1 %v810_v4 }
  0x60   : > { %430 = vmatmul.mubr.f32.gmra.mxu0 %v194_v55 }
  0x61   : > { %435 = vmatprep.mubr.f32.mxu0 %v198_v57 }
  0x62   : > { %633 = vmatmul.mubr.f32.gmra.mxu1 %v217_v62 }
  0x63   : > { %638 = vmatprep.mubr.f32.mxu1 %v810_v4 }
  0x64   : > { %436 = vmatmul.mubr.f32.gmra.mxu0 %v197_v58 }
  0x65   : > { %441 = vmatprep.mubr.f32.mxu0 %v201_v60 }
  0x66   : > { %639 = vmatmul.mubr.f32.gmra.mxu1 %v220_v1 }
  0x67   : > { %644 = vmatprep.mubr.f32.mxu1 %v810_v4 }
  0x68   : > { %442 = vmatmul.mubr.f32.gmra.mxu0 %v200_v61 }
  0x69   : > { %447 = vmatprep.mubr.f32.mxu0 %v204_v63 }
  0x6a   : > { %645 = vmatmul.mubr.f32.gmra.mxu1 %v223_v5 }
  0x6b   : > { %650 = vmatprep.mubr.f32.mxu1 %v810_v4  ;;  %v221_v4 = vld [vmem:[%s1061_s30 + $0x150] sm:$0xff]  ;;  %s791_s30 = sshll.u32 %s1325_s17, 6 }
  0x6c   : > { %448 = vmatmul.mubr.f32.gmra.mxu0 %v203_v0  ;;  %s1224_s16 = scalar_lea.vmem %s1323_s3, %s791_s30 }
  0x6d   : > { %453 = vmatprep.mubr.f32.mxu0 %v207_v2 }
  0x6e   : > { %651 = vmatmul.mubr.f32.gmra.mxu1 %v226_v8 }
  0x70   : > { %454 = vmatmul.mubr.f32.gmra.mxu0 %v206_v3 }
  0x71   : > { %459 = vmatprep.mubr.f32.mxu0 %v210_v6 }
  0x74   : > { %460 = vmatmul.mubr.f32.gmra.mxu0 %v209_v7 }
  0x75   : > { %465 = vmatprep.mubr.f32.mxu0 %v213_v9 }
  0x78   : > { %466 = vmatmul.mubr.f32.gmra.mxu0 %v212_v10 }
  0x79   : > { %471 = vmatprep.mubr.f32.mxu0 %v216_v11 }
  0x7c   : > { %472 = vmatmul.mubr.f32.gmra.mxu0 %v215_v12 }
  0x7d   : > { %477 = vmatprep.mubr.f32.mxu0 %v219_v13 }
  0x80   : > { %478 = vmatmul.mubr.f32.gmra.mxu0 %v218_v14 }
  0x81   : > { %483 = vmatprep.mubr.f32.mxu0 %v222_v15 }
  0x84   : > { %484 = vmatmul.mubr.f32.gmra.mxu0 %v221_v4 }
  0x85   : > { %489 = vmatprep.mubr.f32.mxu0 %v225_v16 }
  0x88   : > { %490 = vmatmul.mubr.f32.gmra.mxu0 %v224_v17 }
  0xf2   : > { %v562_v18 = vpop.f32.mrf.mxu1 }
  0xf4   : > { %v564_v19 = vpop.f32.mrf.mxu1 }
  0xf6   : > { %v568_v20 = vpop.f32.mrf.mxu1 }
  0xf8   : > { %v570_v22 = vpop.f32.mrf.mxu1 }
  0xfa   : > { %v574_v23 = vpop.f32.mrf.mxu1 }
  0xfc   : > { %v576_v25 = vpop.f32.mrf.mxu1 }
  0xfe   : > { %v580_v26 = vpop.f32.mrf.mxu1 }
 0x100   : > { %v582_v29 = vpop.f32.mrf.mxu1 }
 0x102   : > { %v586_v31 = vpop.f32.mrf.mxu1 }
 0x104   : > { %v588_v33 = vpop.f32.mrf.mxu1 }
 0x106   : > { %v1214_v36 = vpop.f32.mrf.mxu1 }
 0x108   : > { %v1218_v39 = vpop.f32.mrf.mxu1 }
 0x10a   : > { %v1226_v43 = vpop.f32.mrf.mxu1 }
 0x10c   : > { %v401_v35 = vpop.f32.mrf.mxu0  ;;  %v1229_v48 = vpop.f32.mrf.mxu1 }
 0x10d   : > { %v402_v37 = vadd.f32 %v401_v35, %v1210_v32 }
 0x10e   : > { %v403_v38 = vpop.f32.mrf.mxu0  ;;  %v1233_v53 = vpop.f32.mrf.mxu1 }
 0x10f   : > { %v563_v40 = vadd.f32 %v562_v18, %v402_v37  ;;  %v404_v41 = vadd.f32 %v403_v38, %v1212_v34 }
 0x110   : > { %v407_v42 = vpop.f32.mrf.mxu0  ;;  %v1237_v58 = vpop.f32.mrf.mxu1 }
 0x111   : > { %v657_v44 = vmax.f32 %v563_v40, 0.0  ;;  %v565_v45 = vadd.f32 %v564_v19, %v404_v41  ;;  %v408_v46 = vadd.f32 %v407_v42, %v1210_v32 }
 0x112   : > { %v409_v47 = vpop.f32.mrf.mxu0  ;;  %v1241_v63 = vpop.f32.mrf.mxu1 }
 0x113   : > { %689 = vst [vmem:[%s1224_s16] sm:$0xff] %v657_v44  ;;  %v658_v49 = vmax.f32 %v565_v45, 0.0  ;;  %v569_v50 = vadd.f32 %v568_v20, %v408_v46  ;;  %v410_v51 = vadd.f32 %v409_v47, %v1212_v34 }
 0x114   : > { %v413_v52 = vpop.f32.mrf.mxu0  ;;  %v1245_v5 = vpop.f32.mrf.mxu1 }
 0x115   : > { %690 = vst [vmem:[%s1224_s16 + $0x8] sm:$0xff] %v658_v49  ;;  %v659_v54 = vmax.f32 %v569_v50, 0.0  ;;  %v571_v55 = vadd.f32 %v570_v22, %v410_v51  ;;  %v414_v56 = vadd.f32 %v413_v52, %v1210_v32 }
 0x116   : > { %v415_v57 = vpop.f32.mrf.mxu0  ;;  %v1249_v10 = vpop.f32.mrf.mxu1 }
 0x117   : > { %691 = vst [vmem:[%s1224_s16 + $0x10] sm:$0xff] %v659_v54  ;;  %v660_v59 = vmax.f32 %v571_v55, 0.0  ;;  %v575_v60 = vadd.f32 %v574_v23, %v414_v56  ;;  %v416_v61 = vadd.f32 %v415_v57, %v1212_v34 }
 0x118   : > { %v419_v62 = vpop.f32.mrf.mxu0  ;;  %v1253_v15 = vpop.f32.mrf.mxu1 }
 0x119   : > { %692 = vst [vmem:[%s1224_s16 + $0x18] sm:$0xff] %v660_v59  ;;  %v661_v0 = vmax.f32 %v575_v60, 0.0  ;;  %v577_v1 = vadd.f32 %v576_v25, %v416_v61  ;;  %v420_v2 = vadd.f32 %v419_v62, %v1210_v32 }
 0x11a   : > { %v421_v3 = vpop.f32.mrf.mxu0  ;;  %v1257_v19 = vpop.f32.mrf.mxu1 }
 0x11b   : > { %693 = vst [vmem:[%s1224_s16 + $0x20] sm:$0xff] %v661_v0  ;;  %v662_v6 = vmax.f32 %v577_v1, 0.0  ;;  %v581_v7 = vadd.f32 %v580_v26, %v420_v2  ;;  %v422_v8 = vadd.f32 %v421_v3, %v1212_v34 }
 0x11c   : > { %v425_v9 = vpop.f32.mrf.mxu0  ;;  %v624_v28 = vpop.f32.mrf.mxu1 }
 0x11d   : > { %694 = vst [vmem:[%s1224_s16 + $0x28] sm:$0xff] %v662_v6  ;;  %v663_v11 = vmax.f32 %v581_v7, 0.0  ;;  %v583_v12 = vadd.f32 %v582_v29, %v422_v8  ;;  %v426_v13 = vadd.f32 %v425_v9, %v1210_v32 }
 0x11e   : > { %v427_v14 = vpop.f32.mrf.mxu0  ;;  %v628_v40 = vpop.f32.mrf.mxu1 }
 0x11f   : > { %695 = vst [vmem:[%s1224_s16 + $0x30] sm:$0xff] %v663_v11  ;;  %v664_v4 = vmax.f32 %v583_v12, 0.0  ;;  %v587_v16 = vadd.f32 %v586_v31, %v426_v13  ;;  %v428_v17 = vadd.f32 %v427_v14, %v1212_v34 }
 0x120   : > { %v431_v18 = vpop.f32.mrf.mxu0  ;;  %v630_v49 = vpop.f32.mrf.mxu1 }
 0x121   : > { %696 = vst [vmem:[%s1224_s16 + $0x38] sm:$0xff] %v664_v4  ;;  %v665_v20 = vmax.f32 %v587_v16, 0.0  ;;  %v589_v21 = vadd.f32 %v588_v33, %v428_v17  ;;  %v432_v22 = vadd.f32 %v431_v18, %v1210_v32 }
 0x122   : > { %v433_v23 = vpop.f32.mrf.mxu0  ;;  %v634_v57 = vpop.f32.mrf.mxu1 }
 0x123   : > { %697 = vst [vmem:[%s1224_s16 + $0x40] sm:$0xff] %v665_v20  ;;  %v666_v24 = vmax.f32 %v589_v21, 0.0  ;;  %v593_v25 = vadd.f32 %v1214_v36, %v432_v22  ;;  %v434_v26 = vadd.f32 %v433_v23, %v1212_v34 }
 0x124   : > { %v437_v27 = vpop.f32.mrf.mxu0  ;;  %v636_v2 = vpop.f32.mrf.mxu1 }
 0x125   : > { %698 = vst [vmem:[%s1224_s16 + $0x48] sm:$0xff] %v666_v24  ;;  %v667_v29 = vmax.f32 %v593_v25, 0.0  ;;  %v595_v30 = vadd.f32 %v1218_v39, %v434_v26  ;;  %v438_v31 = vadd.f32 %v437_v27, %v1210_v32 }
 0x126   : > { %v439_v33 = vpop.f32.mrf.mxu0  ;;  %v640_v12 = vpop.f32.mrf.mxu1 }
 0x127   : > { %699 = vst [vmem:[%s1224_s16 + $0x50] sm:$0xff] %v667_v29  ;;  %v668_v35 = vmax.f32 %v595_v30, 0.0  ;;  %v599_v37 = vadd.f32 %v1226_v43, %v438_v31  ;;  %v440_v38 = vadd.f32 %v439_v33, %v1212_v34 }
 0x128   : > { %v443_v36 = vpop.f32.mrf.mxu0  ;;  %v642_v21 = vpop.f32.mrf.mxu1 }
 0x129   : > { %700 = vst [vmem:[%s1224_s16 + $0x58] sm:$0xff] %v668_v35  ;;  %v669_v41 = vmax.f32 %v599_v37, 0.0  ;;  %v601_v42 = vadd.f32 %v1229_v48, %v440_v38  ;;  %v444_v44 = vadd.f32 %v443_v36, %v1210_v32 }
 0x12a   : > { %v445_v39 = vpop.f32.mrf.mxu0  ;;  %v646_v29 = vpop.f32.mrf.mxu1 }
 0x12b   : > { %701 = vst [vmem:[%s1224_s16 + $0x60] sm:$0xff] %v669_v41  ;;  %v670_v45 = vmax.f32 %v601_v42, 0.0  ;;  %v605_v46 = vadd.f32 %v1233_v53, %v444_v44  ;;  %v446_v47 = vadd.f32 %v445_v39, %v1212_v34 }
 0x12c   : > { %v449_v43 = vpop.f32.mrf.mxu0  ;;  %v648_v41 = vpop.f32.mrf.mxu1 }
 0x12d   : > { %702 = vst [vmem:[%s1224_s16 + $0x68] sm:$0xff] %v670_v45  ;;  %v671_v50 = vmax.f32 %v605_v46, 0.0  ;;  %v607_v51 = vadd.f32 %v1237_v58, %v446_v47  ;;  %v450_v52 = vadd.f32 %v449_v43, %v1210_v32 }
 0x12e   : > { %v451_v48 = vpop.f32.mrf.mxu0 }
 0x12f   : > { %703 = vst [vmem:[%s1224_s16 + $0x70] sm:$0xff] %v671_v50  ;;  %v672_v54 = vmax.f32 %v607_v51, 0.0  ;;  %v611_v55 = vadd.f32 %v1241_v63, %v450_v52  ;;  %v452_v56 = vadd.f32 %v451_v48, %v1212_v34  ;;  %v652_v50 = vpop.f32.mrf.mxu1 }
 0x130   : > { %v455_v53 = vpop.f32.mrf.mxu0 }
 0x131   : > { %704 = vst [vmem:[%s1224_s16 + $0x78] sm:$0xff] %v672_v54  ;;  %v673_v59 = vmax.f32 %v611_v55, 0.0  ;;  %v613_v60 = vadd.f32 %v1245_v5, %v452_v56  ;;  %v456_v61 = vadd.f32 %v455_v53, %v1210_v32 }
 0x132   : > { %v457_v58 = vpop.f32.mrf.mxu0 }
 0x133   : > { %705 = vst [vmem:[%s1224_s16 + $0x80] sm:$0xff] %v673_v59  ;;  %v674_v62 = vmax.f32 %v613_v60, 0.0  ;;  %v617_v0 = vadd.f32 %v1249_v10, %v456_v61  ;;  %v458_v1 = vadd.f32 %v457_v58, %v1212_v34 }
 0x134   : > { %v461_v63 = vpop.f32.mrf.mxu0 }
 0x135   : > { %706 = vst [vmem:[%s1224_s16 + $0x88] sm:$0xff] %v674_v62  ;;  %v675_v3 = vmax.f32 %v617_v0, 0.0  ;;  %v619_v6 = vadd.f32 %v1253_v15, %v458_v1  ;;  %v462_v7 = vadd.f32 %v461_v63, %v1210_v32 }
 0x136   : > { %v463_v5 = vpop.f32.mrf.mxu0 }
 0x137   : > { %707 = vst [vmem:[%s1224_s16 + $0x90] sm:$0xff] %v675_v3  ;;  %v676_v8 = vmax.f32 %v619_v6, 0.0  ;;  %v623_v9 = vadd.f32 %v1257_v19, %v462_v7  ;;  %v464_v11 = vadd.f32 %v463_v5, %v1212_v34 }
 0x138   : > { %v467_v10 = vpop.f32.mrf.mxu0 }
 0x139   : > { %708 = vst [vmem:[%s1224_s16 + $0x98] sm:$0xff] %v676_v8  ;;  %v677_v13 = vmax.f32 %v623_v9, 0.0  ;;  %v625_v14 = vadd.f32 %v624_v28, %v464_v11  ;;  %v468_v4 = vadd.f32 %v467_v10, %v1210_v32 }
 0x13a   : > { %v469_v16 = vpop.f32.mrf.mxu0 }
 0x13b   : > { %709 = vst [vmem:[%s1224_s16 + $0xa0] sm:$0xff] %v677_v13  ;;  %v678_v15 = vmax.f32 %v625_v14, 0.0  ;;  %v629_v17 = vadd.f32 %v628_v40, %v468_v4  ;;  %v470_v18 = vadd.f32 %v469_v16, %v1212_v34 }
 0x13c   : > { %v473_v20 = vpop.f32.mrf.mxu0 }
 0x13d   : > { %710 = vst [vmem:[%s1224_s16 + $0xa8] sm:$0xff] %v678_v15  ;;  %v679_v19 = vmax.f32 %v629_v17, 0.0  ;;  %v631_v22 = vadd.f32 %v630_v49, %v470_v18  ;;  %v474_v23 = vadd.f32 %v473_v20, %v1210_v32 }
 0x13e   : > { %v475_v24 = vpop.f32.mrf.mxu0 }
 0x13f   : > { %711 = vst [vmem:[%s1224_s16 + $0xb0] sm:$0xff] %v679_v19  ;;  %v680_v25 = vmax.f32 %v631_v22, 0.0  ;;  %v635_v26 = vadd.f32 %v634_v57, %v474_v23  ;;  %v476_v27 = vadd.f32 %v475_v24, %v1212_v34  ;;  %v654_v57 = vpop.f32.mrf.mxu1 }
 0x140   : > { %v479_v28 = vpop.f32.mrf.mxu0 }
 0x141   : > { %712 = vst [vmem:[%s1224_s16 + $0xb8] sm:$0xff] %v680_v25  ;;  %v681_v30 = vmax.f32 %v635_v26, 0.0  ;;  %v637_v31 = vadd.f32 %v636_v2, %v476_v27  ;;  %v480_v33 = vadd.f32 %v479_v28, %v1210_v32 }
 0x142   : > { %v481_v35 = vpop.f32.mrf.mxu0 }
 0x143   : > { %713 = vst [vmem:[%s1224_s16 + $0xc0] sm:$0xff] %v681_v30  ;;  %v682_v37 = vmax.f32 %v637_v31, 0.0  ;;  %v641_v38 = vadd.f32 %v640_v12, %v480_v33  ;;  %v482_v36 = vadd.f32 %v481_v35, %v1212_v34 }
 0x144   : > { %v485_v40 = vpop.f32.mrf.mxu0 }
 0x145   : > { %714 = vst [vmem:[%s1224_s16 + $0xc8] sm:$0xff] %v682_v37  ;;  %v683_v42 = vmax.f32 %v641_v38, 0.0  ;;  %v643_v44 = vadd.f32 %v642_v21, %v482_v36  ;;  %v486_v39 = vadd.f32 %v485_v40, %v1210_v32 }
 0x146   : > { %v487_v45 = vpop.f32.mrf.mxu0 }
 0x147   : > { %715 = vst [vmem:[%s1224_s16 + $0xd0] sm:$0xff] %v683_v42  ;;  %v684_v46 = vmax.f32 %v643_v44, 0.0  ;;  %v647_v47 = vadd.f32 %v646_v29, %v486_v39  ;;  %v488_v43 = vadd.f32 %v487_v45, %v1212_v34 }
 0x148   : > { %v491_v49 = vpop.f32.mrf.mxu0 }
 0x149   : > { %716 = vst [vmem:[%s1224_s16 + $0xd8] sm:$0xff] %v684_v46  ;;  %v685_v51 = vmax.f32 %v647_v47, 0.0  ;;  %v649_v52 = vadd.f32 %v648_v41, %v488_v43  ;;  %v492_v48 = vadd.f32 %v491_v49, %v1210_v32 }
 0x14a   : > { %v493_v54 = vpop.f32.mrf.mxu0 }
 0x14b   : > { %717 = vst [vmem:[%s1224_s16 + $0xe0] sm:$0xff] %v685_v51  ;;  %v686_v55 = vmax.f32 %v649_v52, 0.0  ;;  %v653_v56 = vadd.f32 %v652_v50, %v492_v48  ;;  %v494_v53 = vadd.f32 %v493_v54, %v1212_v34 }
 0x14d   : > { %718 = vst [vmem:[%s1224_s16 + $0xe8] sm:$0xff] %v686_v55  ;;  %v687_v59 = vmax.f32 %v653_v56, 0.0  ;;  %v655_v60 = vadd.f32 %v654_v57, %v494_v53 }
 0x14f   : > { %719 = vst [vmem:[%s1224_s16 + $0xf0] sm:$0xff] %v687_v59  ;;  %v688_v61 = vmax.f32 %v655_v60, 0.0 }
 0x151   : > { %720 = vst [vmem:[%s1224_s16 + $0xf8] sm:$0xff] %v688_v61 }
 0x152 PF: > { %s13_s12 = sadd.s32 1, %s808_s12  }
 0x153   : > { %p10_p4 = scmp.ge.s32.totalorder %s13_s12, 4  }
 0x155   :  { %12 = sbr.rel (!%p10_p4) target bundleno = 1 (0x1), region = 62 }

</bundles_post_ra>
